<compile_context>
chip_gen: v5e
topology: v5e:2x2
jax: 0.10.0
libtpu: 0.0.40
codegen_flags: <defaults>
</compile_context>

<pallas_src>
import functools

import jax
import jax.numpy as jnp
from jax import lax
from jax.experimental import pallas as pl
from jax.experimental.pallas import tpu as pltpu


def _integral_kernel(x_ref, o_ref, *, n_bins, n_sides):
    f32 = jnp.float32
    x = x_ref[...].astype(f32)                      # (R, n_sides*n_bins)
    cols = n_sides * n_bins

    # ---- per-group max via a shifted-slice log tree (all groups at once) ----
    # After the loop, t[:, l] = max(x[:, l : l+n_bins]) for every lane l that
    # is a group start (l = g*n_bins), which is all we consume below.
    t = x
    covered = 1
    while covered < n_bins:
        shift = min(covered, n_bins - covered)
        width = t.shape[1] - shift
        t = jnp.maximum(t[:, :width], t[:, shift:shift + width])
        covered += shift
    tw = t.shape[1]                                  # cols - (n_bins - 1)

    # ---- broadcast each group's max back to its n_bins lanes (idle MXU) ----
    # gather_bcast[k, c] = 1 iff k == n_bins * group(c); all other lanes of t
    # are multiplied by 0 and never contribute.
    g_row = lax.broadcasted_iota(jnp.int32, (tw, cols), 0)
    g_col = lax.broadcasted_iota(jnp.int32, (tw, cols), 1)
    col_grp = jnp.zeros((tw, cols), jnp.int32)
    for s in range(1, n_sides):
        col_grp = col_grp + (g_col >= s * n_bins).astype(jnp.int32)
    gather_bcast = (g_row == col_grp * n_bins).astype(jnp.bfloat16)
    m = jnp.dot(t.astype(jnp.bfloat16), gather_bcast,
                preferred_element_type=f32)          # (R, cols), bf16-rounded max

    # The max shift cancels exactly in the num/den ratio; bf16 rounding of the
    # max only costs overflow headroom (irrelevant for |logits| << 1e4).
    e = jnp.exp(x - m)                               # (R, cols), group max ~ 1

    # ---- block-diagonal [proj | ones] reduction matrix, built from iota ----
    w_row = lax.broadcasted_iota(jnp.int32, (cols, 2 * n_sides), 0)
    w_col = lax.broadcasted_iota(jnp.int32, (cols, 2 * n_sides), 1)
    row_grp = jnp.zeros((cols, 2 * n_sides), jnp.int32)
    for s in range(1, n_sides):
        row_grp = row_grp + (w_row >= s * n_bins).astype(jnp.int32)
    bin_idx = (w_row - row_grp * n_bins).astype(f32)           # proj value 0..reg_max
    w = (jnp.where(w_col == row_grp, bin_idx, 0.0)
         + jnp.where(w_col == row_grp + n_sides, 1.0, 0.0))
    w = w.astype(jnp.bfloat16)                       # integers 0..reg_max: exact

    # ---- num/den sums on the MXU with an f32 -> bf16 hi/lo split ----
    e_hi = e.astype(jnp.bfloat16)
    e_lo = (e - e_hi.astype(f32)).astype(jnp.bfloat16)
    r = (jnp.dot(e_hi, w, preferred_element_type=f32)
         + jnp.dot(e_lo, w, preferred_element_type=f32))       # (R, 2*n_sides)

    num = r[:, :n_sides]
    den = r[:, n_sides:]
    inv = pl.reciprocal(den, approx=True)            # EUP vrcp
    inv = inv * (2.0 - den * inv)                    # one Newton step
    o_ref[...] = (num * inv).astype(o_ref.dtype)


def _round_up(v, m):
    return ((v + m - 1) // m) * m


def integral_forward(x, reg_max=16, tile_r=4096):
    """x: (N, 4*(reg_max+1)) -> (N, 4); matches the PyTorch `Integral` module."""
    n_bins = reg_max + 1
    n_sides = 4
    N, C = x.shape
    assert C == n_sides * n_bins

    # Big row tiles to amortize per-grid-step overhead, clamped so that
    # (a) a tile never exceeds the data and (b) the grid keeps >=2 parallel
    # steps whenever possible (v7x has two TensorCores).
    tile_r = max(8, min(tile_r, _round_up(pl.cdiv(N, 2), 8)))
    grid = (pl.cdiv(N, tile_r),)

    return pl.pallas_call(
        functools.partial(_integral_kernel, n_bins=n_bins, n_sides=n_sides),
        out_shape=jax.ShapeDtypeStruct((N, n_sides), x.dtype),
        grid=grid,
        in_specs=[pl.BlockSpec((tile_r, C), lambda i: (i, 0))],
        out_specs=pl.BlockSpec((tile_r, n_sides), lambda i: (i, 0)),
        compiler_params=pltpu.CompilerParams(
            dimension_semantics=("parallel",),
            vmem_limit_bytes=32 * 1024 * 1024),
    )(x)


def _reference(x, reg_max=16):
    n_bins = reg_max + 1
    xf = x.reshape(-1, n_bins).astype(jnp.float32)
    p = jax.nn.softmax(xf, axis=1)
    proj = jnp.linspace(0.0, float(reg_max), n_bins, dtype=jnp.float32)
    return (p @ proj).reshape(-1, 4).astype(x.dtype)


if __name__ == "__main__":
    reg_max = 16
    key = jax.random.PRNGKey(0)

    # N=16: two full 8-row blocks; N=37 / N=301: exercise the ragged (masked)
    # tail block and the multi-step "parallel" grid.
    for N in (16, 37, 301):
        key, sub = jax.random.split(key)
        x = 4.0 * jax.random.normal(sub, (N, 4 * (reg_max + 1)), dtype=jnp.float32)
        out = jax.block_until_ready(integral_forward(x, reg_max=reg_max))

        ref = _reference(x, reg_max=reg_max)
        assert out.shape == (N, 4)
        err = jnp.max(jnp.abs(out - ref))
        assert jnp.allclose(out, ref, atol=1e-4, rtol=1e-4), (
            f"mismatch vs reference for N={N}: max abs err {err}")

    print("KERNEL_OK")
</pallas_src>

<mosaic_0001>
module attributes {stable_mosaic.version = 11 : i64} {
  func.func @_integral_kernel(%arg0: i32, %arg1: memref<8x68xf32, #tpu.memory_space<vmem>>, %arg2: memref<8x4xf32, #tpu.memory_space<vmem>>) attributes {dimension_semantics = [#tpu.dimension_semantics<parallel>], iteration_bounds = array<i64: 2>, scalar_prefetch = 0 : i64, scratch_operands = 0 : i64, tpu.core_type = #tpu.core_type<tc>, window_params = [{transform_indices = @transform_0, window_bounds = array<i64: 8, 68>}, {transform_indices = @transform_1, window_bounds = array<i64: 8, 4>}]} {
    %c0 = arith.constant 0 : index
    %c0_0 = arith.constant 0 : index
    %0 = vector.load %arg1[%c0, %c0_0] : memref<8x68xf32, #tpu.memory_space<vmem>>, vector<8x68xf32>
    %1 = vector.extract_strided_slice %0 {offsets = [0, 0], sizes = [8, 67], strides = [1, 1]} : vector<8x68xf32> to vector<8x67xf32>
    %2 = vector.extract_strided_slice %0 {offsets = [0, 1], sizes = [8, 67], strides = [1, 1]} : vector<8x68xf32> to vector<8x67xf32>
    %3 = arith.maximumf %1, %2 : vector<8x67xf32>
    %4 = vector.extract_strided_slice %3 {offsets = [0, 0], sizes = [8, 65], strides = [1, 1]} : vector<8x67xf32> to vector<8x65xf32>
    %5 = vector.extract_strided_slice %3 {offsets = [0, 2], sizes = [8, 65], strides = [1, 1]} : vector<8x67xf32> to vector<8x65xf32>
    %6 = arith.maximumf %4, %5 : vector<8x65xf32>
    %7 = vector.extract_strided_slice %6 {offsets = [0, 0], sizes = [8, 61], strides = [1, 1]} : vector<8x65xf32> to vector<8x61xf32>
    %8 = vector.extract_strided_slice %6 {offsets = [0, 4], sizes = [8, 61], strides = [1, 1]} : vector<8x65xf32> to vector<8x61xf32>
    %9 = arith.maximumf %7, %8 : vector<8x61xf32>
    %10 = vector.extract_strided_slice %9 {offsets = [0, 0], sizes = [8, 53], strides = [1, 1]} : vector<8x61xf32> to vector<8x53xf32>
    %11 = vector.extract_strided_slice %9 {offsets = [0, 8], sizes = [8, 53], strides = [1, 1]} : vector<8x61xf32> to vector<8x53xf32>
    %12 = arith.maximumf %10, %11 : vector<8x53xf32>
    %13 = vector.extract_strided_slice %12 {offsets = [0, 0], sizes = [8, 52], strides = [1, 1]} : vector<8x53xf32> to vector<8x52xf32>
    %14 = vector.extract_strided_slice %12 {offsets = [0, 1], sizes = [8, 52], strides = [1, 1]} : vector<8x53xf32> to vector<8x52xf32>
    %15 = arith.maximumf %13, %14 : vector<8x52xf32>
    %16 = tpu.iota {dimensions = array<i32: 0>} : vector<52x68xi32>
    %17 = tpu.iota {dimensions = array<i32: 1>} : vector<52x68xi32>
    %c0_i32 = arith.constant 0 : i32
    %18 = vector.broadcast %c0_i32 : i32 to vector<52x68xi32>
    %c17_i32 = arith.constant 17 : i32
    %19 = vector.broadcast %c17_i32 : i32 to vector<52x68xi32>
    %20 = arith.cmpi sge, %17, %19 : vector<52x68xi32>
    %21 = arith.extui %20 : vector<52x68xi1> to vector<52x68xi32>
    %22 = arith.addi %18, %21 : vector<52x68xi32>
    %c34_i32 = arith.constant 34 : i32
    %23 = vector.broadcast %c34_i32 : i32 to vector<52x68xi32>
    %24 = arith.cmpi sge, %17, %23 : vector<52x68xi32>
    %25 = arith.extui %24 : vector<52x68xi1> to vector<52x68xi32>
    %26 = arith.addi %22, %25 : vector<52x68xi32>
    %c51_i32 = arith.constant 51 : i32
    %27 = vector.broadcast %c51_i32 : i32 to vector<52x68xi32>
    %28 = arith.cmpi sge, %17, %27 : vector<52x68xi32>
    %29 = arith.extui %28 : vector<52x68xi1> to vector<52x68xi32>
    %30 = arith.addi %26, %29 : vector<52x68xi32>
    %c17_i32_1 = arith.constant 17 : i32
    %31 = vector.broadcast %c17_i32_1 : i32 to vector<52x68xi32>
    %32 = arith.muli %30, %31 : vector<52x68xi32>
    %33 = arith.cmpi eq, %16, %32 : vector<52x68xi32>
    %34 = arith.extui %33 : vector<52x68xi1> to vector<52x68xi32>
    %35 = arith.sitofp %34 : vector<52x68xi32> to vector<52x68xf32>
    %36 = arith.truncf %35 : vector<52x68xf32> to vector<52x68xbf16>
    %37 = arith.truncf %15 : vector<8x52xf32> to vector<8x52xbf16>
    %cst = arith.constant dense<0.000000e+00> : vector<8x68xf32>
    %38 = tpu.matmul %37, %36, %cst {dimension_numbers = #tpu.dot_dimension_numbers<[1], [0], [0], [1], [0, 0, 1, 1], [], []>} : vector<8x52xbf16>, vector<52x68xbf16>, vector<8x68xf32> -> vector<8x68xf32>
    %39 = arith.subf %0, %38 : vector<8x68xf32>
    %40 = math.exp %39 : vector<8x68xf32>
    %41 = tpu.iota {dimensions = array<i32: 0>} : vector<68x8xi32>
    %42 = tpu.iota {dimensions = array<i32: 1>} : vector<68x8xi32>
    %c0_i32_2 = arith.constant 0 : i32
    %43 = vector.broadcast %c0_i32_2 : i32 to vector<68x8xi32>
    %c17_i32_3 = arith.constant 17 : i32
    %44 = vector.broadcast %c17_i32_3 : i32 to vector<68x8xi32>
    %45 = arith.cmpi sge, %41, %44 : vector<68x8xi32>
    %46 = arith.extui %45 : vector<68x8xi1> to vector<68x8xi32>
    %47 = arith.addi %43, %46 : vector<68x8xi32>
    %c34_i32_4 = arith.constant 34 : i32
    %48 = vector.broadcast %c34_i32_4 : i32 to vector<68x8xi32>
    %49 = arith.cmpi sge, %41, %48 : vector<68x8xi32>
    %50 = arith.extui %49 : vector<68x8xi1> to vector<68x8xi32>
    %51 = arith.addi %47, %50 : vector<68x8xi32>
    %c51_i32_5 = arith.constant 51 : i32
    %52 = vector.broadcast %c51_i32_5 : i32 to vector<68x8xi32>
    %53 = arith.cmpi sge, %41, %52 : vector<68x8xi32>
    %54 = arith.extui %53 : vector<68x8xi1> to vector<68x8xi32>
    %55 = arith.addi %51, %54 : vector<68x8xi32>
    %c17_i32_6 = arith.constant 17 : i32
    %56 = vector.broadcast %c17_i32_6 : i32 to vector<68x8xi32>
    %57 = arith.muli %55, %56 : vector<68x8xi32>
    %58 = arith.subi %41, %57 : vector<68x8xi32>
    %59 = arith.sitofp %58 : vector<68x8xi32> to vector<68x8xf32>
    %60 = arith.cmpi eq, %42, %55 : vector<68x8xi32>
    %cst_7 = arith.constant 0.000000e+00 : f32
    %61 = vector.broadcast %cst_7 : f32 to vector<68x8xf32>
    %62 = arith.select %60, %59, %61 : vector<68x8xi1>, vector<68x8xf32>
    %c4_i32 = arith.constant 4 : i32
    %63 = vector.broadcast %c4_i32 : i32 to vector<68x8xi32>
    %64 = arith.addi %55, %63 : vector<68x8xi32>
    %65 = arith.cmpi eq, %42, %64 : vector<68x8xi32>
    %cst_8 = arith.constant 1.000000e+00 : f32
    %cst_9 = arith.constant 0.000000e+00 : f32
    %66 = vector.broadcast %cst_8 : f32 to vector<68x8xf32>
    %67 = vector.broadcast %cst_9 : f32 to vector<68x8xf32>
    %68 = arith.select %65, %66, %67 : vector<68x8xi1>, vector<68x8xf32>
    %69 = arith.addf %62, %68 : vector<68x8xf32>
    %70 = arith.truncf %69 : vector<68x8xf32> to vector<68x8xbf16>
    %71 = arith.truncf %40 : vector<8x68xf32> to vector<8x68xbf16>
    %72 = arith.extf %71 : vector<8x68xbf16> to vector<8x68xf32>
    %73 = arith.subf %40, %72 : vector<8x68xf32>
    %74 = arith.truncf %73 : vector<8x68xf32> to vector<8x68xbf16>
    %cst_10 = arith.constant dense<0.000000e+00> : vector<8x8xf32>
    %75 = tpu.matmul %71, %70, %cst_10 {dimension_numbers = #tpu.dot_dimension_numbers<[1], [0], [0], [1], [0, 0, 1, 1], [], []>} : vector<8x68xbf16>, vector<68x8xbf16>, vector<8x8xf32> -> vector<8x8xf32>
    %cst_11 = arith.constant dense<0.000000e+00> : vector<8x8xf32>
    %76 = tpu.matmul %74, %70, %cst_11 {dimension_numbers = #tpu.dot_dimension_numbers<[1], [0], [0], [1], [0, 0, 1, 1], [], []>} : vector<8x68xbf16>, vector<68x8xbf16>, vector<8x8xf32> -> vector<8x8xf32>
    %77 = arith.addf %75, %76 : vector<8x8xf32>
    %78 = vector.extract_strided_slice %77 {offsets = [0, 0], sizes = [8, 4], strides = [1, 1]} : vector<8x8xf32> to vector<8x4xf32>
    %79 = vector.extract_strided_slice %77 {offsets = [0, 4], sizes = [8, 4], strides = [1, 1]} : vector<8x8xf32> to vector<8x4xf32>
    %80 = tpu.reciprocal %79 {approx = true} : vector<8x4xf32> -> vector<8x4xf32>
    %81 = arith.mulf %79, %80 : vector<8x4xf32>
    %cst_12 = arith.constant 2.000000e+00 : f32
    %82 = vector.broadcast %cst_12 : f32 to vector<8x4xf32>
    %83 = arith.subf %82, %81 : vector<8x4xf32>
    %84 = arith.mulf %80, %83 : vector<8x4xf32>
    %85 = arith.mulf %78, %84 : vector<8x4xf32>
    %c0_13 = arith.constant 0 : index
    %c0_14 = arith.constant 0 : index
    %86 = vector.load %arg2[%c0_13, %c0_14] : memref<8x4xf32, #tpu.memory_space<vmem>>, vector<8x4xf32>
    tpu.vector_store %arg2[%c0_13, %c0_14], %85 {strides = array<i32>} : memref<8x4xf32, #tpu.memory_space<vmem>>, vector<8x4xf32>,
    return
  }
  func.func @transform_0(%arg0: i32) -> (i32, i32) {
    %c0_i32 = arith.constant 0 : i32
    %c0_i32_0 = arith.constant 0 : i32
    return %arg0, %c0_i32 : i32, i32
  }
  func.func @transform_1(%arg0: i32) -> (i32, i32) {
    %c0_i32 = arith.constant 0 : i32
    %c0_i32_0 = arith.constant 0 : i32
    return %arg0, %c0_i32 : i32, i32
  }
}

</mosaic_0001>

<bundles_post_ra>
// kernel: tpu_custom_call.1
= control target key start
LH: loop header
LB: loop body
LE: loop exit
PB: predicated region body
PF: predicated region fallthrough
CT: control target
= control target key end

     0   :  { %6 = vsyncpa [#allocation3], 0  ;;  %s841_s0 = inlined_call_operand.hbm [shape: f32[16,68], index: 0, kind: input, shape index: {}]   ;;  %s842_s1 = inlined_call_operand.vmem [shape: f32[16,4], index: 1, kind: output, shape index: {}]  }
   0x1   :  { %8 = vsyncpa [#allocation3 + $0x1], 0  ;;  %s669_s6 = smov 0   ;;  %s671_s7 = smov 0  }
   0x2   :  { %s673_s8 = smov 0   ;;  %s675_s9 = smov 0  }
   0x3 LB: > { %s688_s10 = sadd.s32 4294967295, %s650_s9   ;;  %s691_s11 = sadd.s32 1, %s650_s9   ;;  %s650_s9 = sphi %s675_s9, %s849_s9   ;;  %s646_s8 = sphi %s673_s8, %s848_s8   ;;  %s642_s7 = sphi %s671_s7, %s847_s7   ;;  %s638_s6 = sphi %s669_s6, %s846_s6  }
   0x4   : > { %s18_s12 = ssub.s32 %s650_s9, %s691_s11  ;;  %s21_s13 = sadd.s32 1, %s646_s8 }
   0x5   : > { %p19_p0 = scmp.eq.s32.totalorder %s18_s12, 0  ;;  %p28_p1 = scmp.ne.s32.totalorder %s646_s8, %s642_s7 }
   0x6   : > { %p29_p2 = scmp.eq.s32.totalorder %s650_s9, 0  ;;  %p34_p3 = scmp.ne.s32.totalorder %s642_s7, %s638_s6 }
   0x7   : > { %s701_s14 = scalar_select %p19_p0, %s646_s8, %s21_s13  }
   0x8   : > { %p703_p4 = por %p29_p2, %p28_p1  ;;  %p35_p5 = scmp.eq.s32.totalorder %s688_s10, 0 }
   0x9   : > { %p542_p6 = scmp.lt.s32.totalorder %s650_s9, 2  ;;  %s84_s17 = sand.u32 1, %s646_s8  }
   0xa   : > { %p709_p7 = por %p35_p5, %p34_p3  ;;  %s509_s18 = sshll.u32 %s84_s17, 3 }
   0xb   : > { %s510_s19 = sshll.u32 %s650_s9, 3  ;;  %s88_s23 = scalar_lea.vmem [#allocation2], %s509_s18 }
   0xc   : > { %s92_s22 = scalar_lea.hbm %s841_s0, %s510_s19  ;;  %s96_s24 = sshll.u32 %s88_s23, 4  ;;  %s97_s24 = int_to_ptr.vmem [resolvable:$true] %s96_s24 }
   0xd   : > { %s94_s25 = sshll.u32 %s92_s22, 4  ;;  %p720_p8 = pnand %p542_p6, %p703_p4  ;;  %s95_s25 = int_to_ptr.hbm [resolvable:$true] %s94_s25 }
   0xe   : > { %p511_p9 = scmp.ge.s32.totalorder %s650_s9, 1  ;;  %p101_p10 = scmp.lt.s32.totalorder %s650_s9, 3 }
   0xf   : > { %s85_s27 = scalar_lea.sflag [#allocation3], %s84_s17  ;;  %s586_s28 = sshra.s32 %s95_s25, 4  ;;  %s587_s28 = int_to_ptr.hbm [resolvable:$true] %s586_s28 }
  0x10   : > { %s588_s29 = scalar_lea.hbm %s587_s28, 8  ;;  %p590_p12 = pneg %p720_p8 }
  0x11   : > { %p589_p11 = scmp.ne.s32.totalorder %s587_s28, %s588_s29  ;;  %s593_s3 = scalar_lea.hbm %s841_s0, 16 }
  0x12   : > { %p594_p1 = scmp.lt.s32.totalorder %s587_s28, %s841_s0  ;;  %p595_p2 = scmp.lt.s32.totalorder %s593_s3, %s588_s29 }
  0x13   : > { %p591_p13 = pnand %p590_p12, %p589_p11 }
  0x14   : > { %p596_p3 = por %p595_p2, %p594_p1 }
  0x15   : > { %p592_p0 = pneg %p591_p13 }
  0x17   : > { %p597_p4 = pnand %p596_p3, %p592_p0 }
  0x19   : > { %600 = shalt.err (!%p597_p4)
}
  0x1a   : > { %541 = dma.hbm_to_vmem [thread:$0]  (!%p720_p8), %s95_s25, 128, %s97_s24, %s85_s27  }
  0x1b   : > { %p102_p5 = pnand %p511_p9, %p101_p10 }
  0x1c   : > { %s107_s6 = sand.u32 (!%p102_p5), 1, %s642_s7  }
  0x1d   : > { %105 = sbr.rel (%p102_p5) target bundleno = 979 (0x3d3), region = 24  ;;  %s512_s12 = sshll.u32 (!%p102_p5), %s107_s6, 3 }
  0x1e   : > { %s108_s13 = scalar_lea.sflag (!%p102_p5), [#allocation3], %s107_s6  ;;  %s111_s15 = scalar_lea.vmem (!%p102_p5), [#allocation2], %s512_s12 }
  0x22   : > { %633 = dma.done.wait (%p709_p7), %s108_s13, 128  }
  0x23   : > { %635 = vsyncadd (%p709_p7), %s108_s13, 4294967168  ;;  %v745_v0 = vld [vmem:[%s111_s15] sm:$0xff]  ;;  %s652_s17 = smov 127   ;;  %s653_s9 = smov 126   ;;  %v161_v7 = vlaneseq  ;;  %v656_v10 = vmov 0   ;;  %v657_v20 = vmov 0.0  }
  0x24   : > { %137 = vrot.lane.b32.xlu0 %v745_v0, %s652_s17  ;;  %s654_s18 = smov 124   ;;  %s655_s16 = smov 120   ;;  %vm210_vm4 = vcmask 1041408   ;;  %v658_v26 = vmov 1.0|1.0  }
  0x25   : > { %v751_v8 = vand.u32 127, %v161_v7  ;;  %v753_v9 = vshrl.u32 %v161_v7, 7  ;;  %p130_p6 = scmp.lt.s32.totalorder %s688_s10, 1 }
  0x27   : > { %vm171_vm0 = vcmp.ge.s32.totalorder %v751_v8, 17  ;;  %vm173_vm1 = vcmp.ge.s32.totalorder %v751_v8, 34  ;;  %vm176_vm2 = vcmp.ge.s32.totalorder %v751_v8, 51  ;;  %v168_v15 = vadd.s32 48, %v753_v9  ;;  %s851_s10 = smov (!%p130_p6, %s688_s10), 1 }
  0x28   : > { %v172_v11 = vsel %vm171_vm0, 1, %v656_v10  ;;  %v174_v12 = vsel %vm173_vm1, 1, %v656_v10  ;;  %v177_v13 = vsel %vm176_vm2, 1, %v656_v10  ;;  %v763_v18 = vadd.s32 32, %v753_v9  ;;  %s513_s19 = sshll.u32 %s851_s10, 3 }
  0x29   : > { %v175_v14 = vadd.s32 %v174_v12, %v172_v11  ;;  %v766_v19 = vadd.s32 40, %v753_v9  ;;  %v772_v23 = vadd.s32 16, %v753_v9  ;;  %v775_v24 = vadd.s32 24, %v753_v9  ;;  %s133_s22 = scalar_lea.vmem %s842_s1, %s513_s19 }
  0x2a   : > { %v782_v29 = vadd.s32 8, %v753_v9  ;;  %v231_v30 = vadd.s32 64, %v753_v9  ;;  %v230_v31 = vadd.s32 56, %v753_v9  ;;  %vm365_vm14 = vcmp.eq.s32.totalorder %v751_v8, 7 }
  0x2b   : > { %v178_v16 = vadd.s32 %v177_v13, %v175_v14  ;;  %vm283_vm15 = vcmp.ge.s32.totalorder %v168_v15, 51  ;;  %vm338_vm0 = vcmp.eq.s32.totalorder %v751_v8, 3  ;;  %v374_v37 = vsel %vm365_vm14, 1.0, %v657_v20 }
  0x2c   : > { %v531_v32 = vadd.s32 4294967245, %v231_v30  ;;  %v292_v33 = vsel %vm283_vm15, 1, %v656_v10  ;;  %v530_v34 = vadd.s32 4294967245, %v230_v31  ;;  %v529_v58 = vadd.s32 4294967262, %v766_v19 }
  0x2d   : > { %v179_v17 = vmul.u32 17, %v178_v16  ;;  %v301_v35 = vadd.s32 2, %v292_v33  ;;  %v528_v63 = vadd.s32 4294967279, %v775_v24  ;;  %vm331_vm14 = vcmp.eq.s32.totalorder %v751_v8, 0 }
  0x2e   : > { %v330_v36 = vcvt.s32.f32 %v531_v32  ;;  %v329_v38 = vcvt.s32.f32 %v530_v34  ;;  %vm358_vm15 = vcmp.eq.s32.totalorder %v751_v8, 4 }
  0x2f   : > { %vm186_vm3 = vcmp.eq.s32.totalorder %v168_v15, %v179_v17  ;;  %vm184_vm5 = vcmp.eq.s32.totalorder %v763_v18, %v179_v17  ;;  %vm185_vm6 = vcmp.eq.s32.totalorder %v766_v19, %v179_v17  ;;  %vm182_vm8 = vcmp.eq.s32.totalorder %v772_v23, %v179_v17 }
  0x30   : > { %v520_v21 = vsel %vm186_vm3, 1.0, %v657_v20  ;;  %vm521_vm7 = vmpackc.low %vm185_vm6, %vm184_vm5  ;;  %vm183_vm9 = vcmp.eq.s32.totalorder %v775_v24, %v179_v17  ;;  %vm180_vm11 = vcmp.eq.s32.totalorder %v753_v9, %v179_v17  ;;  %vm181_vm12 = vcmp.eq.s32.totalorder %v782_v29, %v179_v17 }
  0x31   : > { %v204_v22 = vpack.c.bf16 %v520_v21, %v520_v21  ;;  %vm523_vm10 = vmpackc.low %vm183_vm9, %vm182_vm8  ;;  %v310_v39 = vmul.u32 17, %v301_v35  ;;  %v355_v40 = vadd.s32 4, %v301_v35  ;;  %v348_v41 = vsel %vm338_vm0, %v330_v36, 0.0 }
  0x32   : > { %vm525_vm13 = vmpackc.low %vm181_vm12, %vm180_vm11  ;;  %v384_v42 = vadd.f32 %v374_v37, %v348_v41  ;;  %v347_v44 = vsel %vm338_vm0, %v329_v38, 0.0  ;;  %vm337_vm2 = vcmp.eq.s32.totalorder %v751_v8, %v301_v35  ;;  %vm206_vm3 = vcmask 424960  }
  0x33   : > { %v212_v25 = vsel %vm210_vm4, %v204_v22, 0  ;;  %v319_v43 = vsub.s32 %v168_v15, %v310_v39  ;;  %vm364_vm1 = vcmp.eq.s32.totalorder %v751_v8, %v355_v40  ;;  %v383_v48 = vadd.f32 %v374_v37, %v347_v44 }
  0x34   : > { %218 = vmatpush.bf16.msra.mxu0 %v212_v25  ;;  %v389_v45 = vpack.c.bf16 %v384_v42, %v384_v42  ;;  %v373_v47 = vsel %vm364_vm1, 1.0, %v657_v20  ;;  %vm254_vm5 = vcmp.ge.s32.totalorder %v763_v18, 34  ;;  %vm363_vm9 = vcmp.eq.s32.totalorder %v751_v8, 6 }
  0x35   : > { %v328_v46 = vcvt.s32.f32 %v319_v43  ;;  %v263_v56 = vsel %vm254_vm5, 1, %v656_v10  ;;  %v372_v7 = vsel %vm363_vm9, 1.0, %v657_v20  ;;  %v325_v14 = vcvt.s32.f32 %v528_v63 }
  0x36   : > { %v399_v49 = vsel %vm210_vm4, %v389_v45, 0  ;;  %v272_v57 = vadd.s32 1, %v263_v56  ;;  %vm234_vm4 = vcmp.ge.s32.totalorder %v772_v23, 17  ;;  %vm334_vm11 = vcmp.eq.s32.totalorder %v751_v8, 1 }
  0x37   : > { %v346_v50 = vsel %vm337_vm2, %v328_v46, 0.0  ;;  %420 = vmatpush.bf16.msra.mxu2 %v399_v49  ;;  %404 = vmatpush.bf16.msra.mxu1 %v399_v49  ;;  %v243_v62 = vsel %vm234_vm4, 1, %v656_v10  ;;  %v343_v17 = vsel %vm334_vm11, %v325_v14, 0.0  ;;  %v322_v24 = vcvt.s32.f32 %v753_v9 }
  0x38   : > { %522 = vmatpush.bf16.msk.msra.mxu0 %vm521_vm7, %v658_v26  ;;  %v382_v51 = vadd.f32 %v373_v47, %v346_v50  ;;  %v308_v59 = vmul.u32 17, %v272_v57  ;;  %v353_v61 = vadd.s32 4, %v272_v57  ;;  %vm335_vm6 = vcmp.eq.s32.totalorder %v751_v8, %v272_v57 }
  0x39   : > { %vm336_vm7 = vcmp.eq.s32.totalorder %v751_v8, 2  ;;  %v351_v13 = vadd.s32 4, %v243_v62  ;;  %v323_v25 = vcvt.s32.f32 %v782_v29  ;;  %v367_v30 = vsel %vm358_vm15, 1.0, %v657_v20 }
  0x3a   : > { %v388_v52 = vpack.c.bf16 %v383_v48, %v382_v51  ;;  %v317_v60 = vsub.s32 %v763_v18, %v308_v59  ;;  %vm362_vm8 = vcmp.eq.s32.totalorder %v751_v8, %v353_v61  ;;  %vm394_vm0 = vcmask 556032  }
  0x3b   : > { %vm360_vm12 = vcmp.eq.s32.totalorder %v751_v8, %v351_v13  ;;  %vm439_vm1 = vcmask 31744  }
  0x3c   : > { %524 = vmatpush.bf16.msk.msra.mxu0 %vm523_vm10, %v658_v26  ;;  %421 = vmatpush.bf16.msra.mxu2 %v388_v52  ;;  %vm333_vm10 = vcmp.eq.s32.totalorder %v751_v8, %v243_v62  ;;  %v369_v19 = vsel %vm360_vm12, 1.0, %v657_v20 }
  0x3d   : > { %405 = vmatpush.bf16.msra.mxu1 %v388_v52 }
  0x40   : > { %526 = vmatpush.bf16.msk.msra.mxu0 %vm525_vm13, %v658_v26  ;;  %vm361_vm13 = vcmp.eq.s32.totalorder %v751_v8, 5 }
  0x41   : > { %v370_v21 = vsel %vm361_vm13, 1.0, %v657_v20 }
  0x96   : > { %v138_v1 = vpop.permute.xlu0 %137 }
  0x97   : > { %v140_v2 = vmax.f32 %v745_v0, %v138_v1  ;;  %v326_v1 = vcvt.s32.f32 %v317_v60 }
  0x99   : > { %142 = vrot.lane.b32.xlu0 %v140_v2, %s653_s9 }
 0x10b   : > { %v143_v3 = vpop.permute.xlu0 %142 }
 0x10c   : > { %v145_v4 = vmax.f32 %v140_v2, %v143_v3  ;;  %v327_v2 = vcvt.s32.f32 %v529_v58  ;;  %v306_v3 = vmul.u32 17, %v243_v62 }
 0x10e   : > { %147 = vrot.lane.b32.xlu1 %v145_v4, %s654_s18  ;;  %v315_v12 = vsub.s32 %v772_v23, %v306_v3  ;;  %v379_v23 = vadd.f32 %v370_v21, %v343_v17 }
 0x110   : > { %v324_v16 = vcvt.s32.f32 %v315_v12 }
 0x112   : > { %v342_v18 = vsel %vm333_vm10, %v324_v16, 0.0 }
 0x113   : > { %v378_v22 = vadd.f32 %v369_v19, %v342_v18 }
 0x115   : > { %v386_v26 = vpack.c.bf16 %v379_v23, %v378_v22 }
 0x180   : > { %v148_v5 = vpop.permute.xlu1 %147 }
 0x181   : > { %v150_v6 = vmax.f32 %v145_v4, %v148_v5  ;;  %v344_v4 = vsel %vm335_vm6, %v326_v1, 0.0  ;;  %v345_v5 = vsel %vm336_vm7, %v327_v2, 0.0 }
 0x182   : > { %v381_v11 = vadd.f32 %v372_v7, %v345_v5 }
 0x183   : > { %152 = vrot.lane.b32.xlu1 %v150_v6, %s655_s16 }
 0x1f5   : > { %v153_v27 = vpop.permute.xlu1 %152 }
 0x1f6   : > { %v155_v28 = vmax.f32 %v150_v6, %v153_v27  ;;  %v371_v6 = vsel %vm362_vm8, 1.0, %v657_v20  ;;  %v340_v27 = vsel %vm331_vm14, %v322_v24, 0.0 }
 0x1f7   : > { %v380_v10 = vadd.f32 %v371_v6, %v344_v4  ;;  %v376_v31 = vadd.f32 %v367_v30, %v340_v27 }
 0x1f8   : > { %157 = vrot.lane.b32.xlu2 %v155_v28, %s652_s17 }
 0x1f9   : > { %v387_v15 = vpack.c.bf16 %v381_v11, %v380_v10 }
 0x1fb   : > { %422 = vmatpush.bf16.msra.mxu2 %v387_v15  ;;  %406 = vmatpush.bf16.msra.mxu1 %v387_v15 }
 0x1ff   : > { %423 = vmatpush.bf16.msra.mxu2 %v386_v26  ;;  %407 = vmatpush.bf16.msra.mxu1 %v386_v26 }
 0x252   : > { %v158_v53 = vpop.permute.xlu2 %157 }
 0x253   : > { %v160_v54 = vmax.f32 %v155_v28, %v158_v53  ;;  %v341_v28 = vsel %vm331_vm14, %v323_v25, 0.0 }
 0x254   : > { %v377_v32 = vadd.f32 %v367_v30, %v341_v28 }
 0x255   : > { %v205_v55 = vpack.c.bf16 %v160_v54, %v160_v54 }
 0x256   : > { %v385_v33 = vpack.c.bf16 %v377_v32, %v376_v31 }
 0x257   : > { %527 = vmatmul.msk.bf16.vlgmr.msra.gmra.mxu0 %vm206_vm3, %v205_v55 }
 0x258   : > { %424 = vmatpush.bf16.msra.mxu2 %v385_v33  ;;  %408 = vmatpush.bf16.msra.mxu1 %v385_v33 }
 0x2d4   : > { %v223_v34 = vpop.f32.mrf.mxu0 }
 0x2d5   : > { %v227_v9 = vsub.f32 %v745_v0, %v223_v34 }
 0x2d7   : > { %v228_v29 = vmul.f32 1.442695, %v227_v9 }
 0x2d9   : > { %582 = vpow2.f32 %v228_v29 }
 0x2dc   : > { %v225_v35 = vpop.f32.mrf.mxu0 }
 0x2df   : > { %v583_v36 = vpop.eup %582 }
 0x2e0   : > { %v390_v8 = vpack.c.bf16 %v583_v36, %v583_v36 }
 0x2e2   : > { %v391_v37 = vunpack.c.l.bf16 %v390_v8  ;;  %533 = vmatmul.msk.bf16.vlgmr.msra.gmra.mxu2 %vm394_vm0, %v390_v8 }
 0x2e4   : > { %v392_v20 = vsub.f32 %v583_v36, %v391_v37 }
 0x2e6   : > { %v393_v38 = vpack.c.bf16 %v392_v20, %v392_v20 }
 0x2e8   : > { %532 = vmatmul.msk.bf16.vlgmr.msra.gmra.mxu1 %vm394_vm0, %v393_v38 }
 0x365   : > { %v410_v39 = vpop.f32.mrf.mxu1  ;;  %v426_v40 = vpop.f32.mrf.mxu2 }
 0x366   : > { %v427_v41 = vadd.f32 %v426_v40, %v410_v39 }
 0x368   : > { %584 = vrcp.f32 %v427_v41 }
 0x36d   : > { %v412_v42 = vpop.f32.mrf.mxu1  ;;  %v428_v43 = vpop.f32.mrf.mxu2 }
 0x36e   : > { %v585_v0 = vpop.eup %584 }
 0x36f   : > { %v431_v44 = vmul.f32 %v585_v0, %v427_v41 }
 0x371   : > { %v432_v45 = vsub.f32 2.0, %v431_v44 }
 0x373   : > { %v433_v46 = vmul.f32 %v585_v0, %v432_v45 }
 0x375   : > { %435 = vrot.lane.b32.xlu2 %v433_v46, %s654_s18 }
 0x3cf   : > { %v436_v47 = vpop.permute.xlu2 %435 }
 0x3d0   : > { %v438_v48 = vmul.f32 %v436_v47, %v427_v41 }
 0x3d2   : > { %440 = vst.msk [vmem:[%s133_s22] sm:$0xff] %vm439_vm1, %v438_v48 }
 0x3d3 PF: > { %p11_p7 = scmp.ge.s32.totalorder %s691_s11, 4   ;;  %s846_s6 = smov %s642_s7 }
 0x3d4   : > { %s847_s7 = smov %s646_s8  ;;  %s848_s8 = smov %s701_s14 }
 0x3d5   : > { %s849_s9 = smov %s691_s11  ;;  %13 = sbr.rel (!%p11_p7) target bundleno = 3 (0x3), region = 64 }
 0x3da   :  { %460 = vsyncpa [#allocation3], 1 }
 0x3db   :  { %462 = vsyncpa [#allocation3 + $0x1], 1 }

</bundles_post_ra>
